<compile_context>
chip_gen: v5e
topology: v5e:2x2
jax: 0.10.0
libtpu: 0.0.40
codegen_flags: <defaults>
</compile_context>

<pallas_src>
import jax
import jax.numpy as jnp
from jax.experimental import pallas as pl
from jax.experimental.pallas import tpu as pltpu

# ----------------------------------------------------------------------------
# Logical dims of the PyTorch module and padded (aligned) dims
# ----------------------------------------------------------------------------
ENC_DIMS = [(202, 100), (100, 100), (100, 100), (100, 100), (100, 2)]
DEC_DIMS = [(2, 100), (100, 100), (100, 100), (100, 100), (100, 202)]

IN_PAD = 256     # 202 -> 256  (encoder input lanes / decoder output lanes)
HID_PAD = 128    # 100 -> 128, 2 -> 128 (hidden + latent lanes)
BIAS_ROWS = 16   # 10 bias rows, padded to a sublane multiple
MAX_BATCH_TILE = 256


def _round_up(n, m):
    return ((n + m - 1) // m) * m


# ----------------------------------------------------------------------------
# Kernels
# ----------------------------------------------------------------------------
def _ae_encoder_mode_kernel(x_ref, ew_ref, dw_ref, b_ref, dec_ref, enc_ref):
    # ---- encoder: 4 x (Linear + ReLU), then Linear(->latent) ----
    h = x_ref[...]                                                   # (TB, 256)
    h = jnp.maximum(
        jnp.dot(h, ew_ref[0], preferred_element_type=jnp.float32)
        + b_ref[0:1, 0:HID_PAD],
        0.0)                                                         # (TB, 128)
    for i in range(1, 4):
        h = jnp.maximum(
            jnp.dot(h, ew_ref[i, 0:HID_PAD, :],
                    preferred_element_type=jnp.float32)
            + b_ref[i:i + 1, 0:HID_PAD],
            0.0)
    encoded = (jnp.dot(h, ew_ref[4, 0:HID_PAD, :],
                       preferred_element_type=jnp.float32)
               + b_ref[4:5, 0:HID_PAD])                              # (TB, 128)
    enc_ref[...] = encoded.astype(enc_ref.dtype)                     # lane-dense store

    # ---- decoder: 4 x (Linear + ReLU), then Linear(->256) + Sigmoid ----
    h = encoded
    for i in range(4):
        h = jnp.maximum(
            jnp.dot(h, dw_ref[i, :, 0:HID_PAD],
                    preferred_element_type=jnp.float32)
            + b_ref[5 + i:6 + i, 0:HID_PAD],
            0.0)
    decoded = (jnp.dot(h, dw_ref[4], preferred_element_type=jnp.float32)
               + b_ref[9:10, 0:IN_PAD])                              # (TB, 256)
    dec_ref[...] = jax.nn.sigmoid(decoded).astype(dec_ref.dtype)


def _ae_decoder_only_kernel(x_ref, dw_ref, b_ref, dec_ref):
    h = x_ref[...]                                                   # (TB, 128)
    for i in range(4):
        h = jnp.maximum(
            jnp.dot(h, dw_ref[i, :, 0:HID_PAD],
                    preferred_element_type=jnp.float32)
            + b_ref[5 + i:6 + i, 0:HID_PAD],
            0.0)
    decoded = (jnp.dot(h, dw_ref[4], preferred_element_type=jnp.float32)
               + b_ref[9:10, 0:IN_PAD])
    dec_ref[...] = jax.nn.sigmoid(decoded).astype(dec_ref.dtype)


# ----------------------------------------------------------------------------
# Parameter init (torch-like, deterministic) and one-time padded packing
# ----------------------------------------------------------------------------
def init_params(key):
    params = {"enc": [], "dec": []}
    for name, dims in (("enc", ENC_DIMS), ("dec", DEC_DIMS)):
        for (fan_in, fan_out) in dims:
            key, kw, kb = jax.random.split(key, 3)
            bound = 1.0 / jnp.sqrt(fan_in)
            # Weight stored as (in, out):  y = x @ W + b
            w = jax.random.uniform(kw, (fan_in, fan_out), jnp.float32, -bound, bound)
            b = jax.random.uniform(kb, (1, fan_out), jnp.float32, -bound, bound)
            params[name].append((w, b))
    return params


def pack_params(params):
    """Zero-pad and pack the 20 tensors into 3 aligned slabs (done once)."""
    enc_w = jnp.zeros((5, IN_PAD, HID_PAD), jnp.float32)
    dec_w = jnp.zeros((5, HID_PAD, IN_PAD), jnp.float32)
    bias = jnp.zeros((BIAS_ROWS, IN_PAD), jnp.float32)
    for i, (w, b) in enumerate(params["enc"]):
        enc_w = enc_w.at[i, :w.shape[0], :w.shape[1]].set(w)
        bias = bias.at[i, :b.shape[-1]].set(b.reshape(-1))
    for i, (w, b) in enumerate(params["dec"]):
        dec_w = dec_w.at[i, :w.shape[0], :w.shape[1]].set(w)
        bias = bias.at[5 + i, :b.shape[-1]].set(b.reshape(-1))
    return {"enc_w": enc_w, "dec_w": dec_w, "bias": bias}


# ----------------------------------------------------------------------------
# Wrapper
# ----------------------------------------------------------------------------
def _batch_tiling(batch):
    tb = min(MAX_BATCH_TILE, _round_up(max(batch, 1), 8))
    return tb, _round_up(batch, tb)


def ae_forward(packed, x, mode="encoder"):
    """Pallas implementation of AE.forward on pre-packed padded params."""
    batch = x.shape[0]
    tb, batch_pad = _batch_tiling(batch)
    grid = (batch_pad // tb,)
    ew, dw, b = packed["enc_w"], packed["dec_w"], packed["bias"]

    # Weights stay VMEM-resident across grid steps (constant block index).
    w_specs = [
        pl.BlockSpec((5, IN_PAD, HID_PAD), lambda i: (0, 0, 0)),
        pl.BlockSpec((5, HID_PAD, IN_PAD), lambda i: (0, 0, 0)),
        pl.BlockSpec((BIAS_ROWS, IN_PAD), lambda i: (0, 0)),
    ]
    cparams = pltpu.CompilerParams(dimension_semantics=("parallel",))

    if mode == "encoder":
        xp = jnp.zeros((batch_pad, IN_PAD), jnp.float32).at[:batch, :202].set(x)
        decoded_p, encoded_p = pl.pallas_call(
            _ae_encoder_mode_kernel,
            out_shape=(
                jax.ShapeDtypeStruct((batch_pad, IN_PAD), jnp.float32),   # decoded (padded)
                jax.ShapeDtypeStruct((batch_pad, HID_PAD), jnp.float32),  # encoded (padded)
            ),
            grid=grid,
            in_specs=[pl.BlockSpec((tb, IN_PAD), lambda i: (i, 0))] + w_specs,
            out_specs=(
                pl.BlockSpec((tb, IN_PAD), lambda i: (i, 0)),
                pl.BlockSpec((tb, HID_PAD), lambda i: (i, 0)),
            ),
            compiler_params=cparams,
        )(xp, ew, dw, b)
        return decoded_p[:batch, :202], encoded_p[:batch, :2]

    if mode == "decoder_only":
        xp = jnp.zeros((batch_pad, HID_PAD), jnp.float32).at[:batch, :2].set(x)
        decoded_p = pl.pallas_call(
            _ae_decoder_only_kernel,
            out_shape=jax.ShapeDtypeStruct((batch_pad, IN_PAD), jnp.float32),
            grid=grid,
            in_specs=[pl.BlockSpec((tb, HID_PAD), lambda i: (i, 0))] + w_specs[1:],
            out_specs=pl.BlockSpec((tb, IN_PAD), lambda i: (i, 0)),
            compiler_params=cparams,
        )(xp, dw, b)
        return decoded_p[:batch, :202]

    raise ValueError(f"unknown mode: {mode}")


# ----------------------------------------------------------------------------
# Pure-JAX reference for verification (uses the unpacked params)
# ----------------------------------------------------------------------------
def ref_forward(params, x, mode="encoder"):
    def mlp(layers, h, final_act):
        n = len(layers)
        for i, (w, bb) in enumerate(layers):
            h = h @ w + bb
            if i < n - 1:
                h = jnp.maximum(h, 0.0)
        return final_act(h)

    if mode == "encoder":
        encoded = mlp(params["enc"], x, lambda z: z)
        decoded = mlp(params["dec"], encoded, jax.nn.sigmoid)
        return decoded, encoded
    return mlp(params["dec"], x, jax.nn.sigmoid)


# ----------------------------------------------------------------------------
if __name__ == "__main__":
    key = jax.random.PRNGKey(0)
    key, kp, kx, kz, kbig = jax.random.split(key, 5)

    params = init_params(kp)
    packed = pack_params(params)

    # --- Encoder mode, small batch: x is (8, 202) ---
    batch = 8
    x = jax.random.normal(kx, (batch, 202), jnp.float32)
    decoded, encoded = ae_forward(packed, x, mode="encoder")
    decoded = jax.block_until_ready(decoded)
    encoded = jax.block_until_ready(encoded)

    ref_dec, ref_enc = ref_forward(params, x, mode="encoder")
    assert decoded.shape == (batch, 202) and encoded.shape == (batch, 2)
    assert jnp.allclose(decoded, ref_dec, atol=1e-5, rtol=1e-5)
    assert jnp.allclose(encoded, ref_enc, atol=1e-5, rtol=1e-5)

    # --- Encoder mode, larger batch to exercise the batch grid (>1 tile) ---
    xb = jax.random.normal(kbig, (600, 202), jnp.float32)
    dec_b, enc_b = ae_forward(packed, xb, mode="encoder")
    dec_b = jax.block_until_ready(dec_b)
    enc_b = jax.block_until_ready(enc_b)
    ref_dec_b, ref_enc_b = ref_forward(params, xb, mode="encoder")
    assert jnp.allclose(dec_b, ref_dec_b, atol=1e-5, rtol=1e-5)
    assert jnp.allclose(enc_b, ref_enc_b, atol=1e-5, rtol=1e-5)

    # --- Decoder-only mode: x is (8, 2) ---
    z = jax.random.normal(kz, (batch, 2), jnp.float32)
    dec_only = jax.block_until_ready(ae_forward(packed, z, mode="decoder_only"))
    assert jnp.allclose(dec_only, ref_forward(params, z, mode="decoder_only"),
                        atol=1e-5, rtol=1e-5)

    print("KERNEL_OK")
</pallas_src>

<mosaic_0001>
module attributes {stable_mosaic.version = 11 : i64} {
  func.func @_ae_encoder_mode_kernel(%arg0: i32, %arg1: memref<8x256xf32, #tpu.memory_space<vmem>>, %arg2: memref<5x256x128xf32, #tpu.memory_space<vmem>>, %arg3: memref<5x128x256xf32, #tpu.memory_space<vmem>>, %arg4: memref<16x256xf32, #tpu.memory_space<vmem>>, %arg5: memref<8x256xf32, #tpu.memory_space<vmem>>, %arg6: memref<8x128xf32, #tpu.memory_space<vmem>>) attributes {dimension_semantics = [#tpu.dimension_semantics<parallel>], iteration_bounds = array<i64: 1>, scalar_prefetch = 0 : i64, scratch_operands = 0 : i64, tpu.core_type = #tpu.core_type<tc>, window_params = [{transform_indices = @transform_0, window_bounds = array<i64: 8, 256>}, {pipeline_mode = #tpu.pipeline_mode<synchronous>, transform_indices = @transform_1, window_bounds = array<i64: 5, 256, 128>}, {pipeline_mode = #tpu.pipeline_mode<synchronous>, transform_indices = @transform_2, window_bounds = array<i64: 5, 128, 256>}, {pipeline_mode = #tpu.pipeline_mode<synchronous>, transform_indices = @transform_3, window_bounds = array<i64: 16, 256>}, {transform_indices = @transform_4, window_bounds = array<i64: 8, 256>}, {transform_indices = @transform_5, window_bounds = array<i64: 8, 128>}]} {
    %c0 = arith.constant 0 : index
    %c0_0 = arith.constant 0 : index
    %0 = vector.load %arg1[%c0, %c0_0] : memref<8x256xf32, #tpu.memory_space<vmem>>, vector<8x256xf32>
    %c0_1 = arith.constant 0 : index
    %c0_2 = arith.constant 0 : index
    %c0_3 = arith.constant 0 : index
    %1 = vector.load %arg2[%c0_1, %c0_2, %c0_3] : memref<5x256x128xf32, #tpu.memory_space<vmem>>, vector<1x256x128xf32>
    %2 = vector.shape_cast %1 : vector<1x256x128xf32> to vector<256x128xf32>
    %cst = arith.constant dense<0.000000e+00> : vector<8x128xf32>
    %3 = tpu.matmul %0, %2, %cst {dimension_numbers = #tpu.dot_dimension_numbers<[1], [0], [0], [1], [0, 0, 1, 1], [], []>} : vector<8x256xf32>, vector<256x128xf32>, vector<8x128xf32> -> vector<8x128xf32>
    %c0_4 = arith.constant 0 : index
    %c0_5 = arith.constant 0 : index
    %4 = vector.load %arg4[%c0_4, %c0_5] : memref<16x256xf32, #tpu.memory_space<vmem>>, vector<1x128xf32>
    %5 = vector.broadcast %4 : vector<1x128xf32> to vector<8x128xf32>
    %6 = arith.addf %3, %5 : vector<8x128xf32>
    %cst_6 = arith.constant 0.000000e+00 : f32
    %7 = vector.broadcast %cst_6 : f32 to vector<8x128xf32>
    %8 = arith.maximumf %6, %7 : vector<8x128xf32>
    %c1 = arith.constant 1 : index
    %c0_7 = arith.constant 0 : index
    %c0_8 = arith.constant 0 : index
    %9 = vector.load %arg2[%c1, %c0_7, %c0_8] : memref<5x256x128xf32, #tpu.memory_space<vmem>>, vector<1x128x128xf32>
    %10 = vector.shape_cast %9 : vector<1x128x128xf32> to vector<128x128xf32>
    %cst_9 = arith.constant dense<0.000000e+00> : vector<8x128xf32>
    %11 = tpu.matmul %8, %10, %cst_9 {dimension_numbers = #tpu.dot_dimension_numbers<[1], [0], [0], [1], [0, 0, 1, 1], [], []>} : vector<8x128xf32>, vector<128x128xf32>, vector<8x128xf32> -> vector<8x128xf32>
    %c1_10 = arith.constant 1 : index
    %c0_11 = arith.constant 0 : index
    %12 = vector.load %arg4[%c1_10, %c0_11] : memref<16x256xf32, #tpu.memory_space<vmem>>, vector<1x128xf32>
    %13 = vector.broadcast %12 : vector<1x128xf32> to vector<8x128xf32>
    %14 = arith.addf %11, %13 : vector<8x128xf32>
    %cst_12 = arith.constant 0.000000e+00 : f32
    %15 = vector.broadcast %cst_12 : f32 to vector<8x128xf32>
    %16 = arith.maximumf %14, %15 : vector<8x128xf32>
    %c2 = arith.constant 2 : index
    %c0_13 = arith.constant 0 : index
    %c0_14 = arith.constant 0 : index
    %17 = vector.load %arg2[%c2, %c0_13, %c0_14] : memref<5x256x128xf32, #tpu.memory_space<vmem>>, vector<1x128x128xf32>
    %18 = vector.shape_cast %17 : vector<1x128x128xf32> to vector<128x128xf32>
    %cst_15 = arith.constant dense<0.000000e+00> : vector<8x128xf32>
    %19 = tpu.matmul %16, %18, %cst_15 {dimension_numbers = #tpu.dot_dimension_numbers<[1], [0], [0], [1], [0, 0, 1, 1], [], []>} : vector<8x128xf32>, vector<128x128xf32>, vector<8x128xf32> -> vector<8x128xf32>
    %c2_16 = arith.constant 2 : index
    %c0_17 = arith.constant 0 : index
    %20 = vector.load %arg4[%c2_16, %c0_17] : memref<16x256xf32, #tpu.memory_space<vmem>>, vector<1x128xf32>
    %21 = vector.broadcast %20 : vector<1x128xf32> to vector<8x128xf32>
    %22 = arith.addf %19, %21 : vector<8x128xf32>
    %cst_18 = arith.constant 0.000000e+00 : f32
    %23 = vector.broadcast %cst_18 : f32 to vector<8x128xf32>
    %24 = arith.maximumf %22, %23 : vector<8x128xf32>
    %c3 = arith.constant 3 : index
    %c0_19 = arith.constant 0 : index
    %c0_20 = arith.constant 0 : index
    %25 = vector.load %arg2[%c3, %c0_19, %c0_20] : memref<5x256x128xf32, #tpu.memory_space<vmem>>, vector<1x128x128xf32>
    %26 = vector.shape_cast %25 : vector<1x128x128xf32> to vector<128x128xf32>
    %cst_21 = arith.constant dense<0.000000e+00> : vector<8x128xf32>
    %27 = tpu.matmul %24, %26, %cst_21 {dimension_numbers = #tpu.dot_dimension_numbers<[1], [0], [0], [1], [0, 0, 1, 1], [], []>} : vector<8x128xf32>, vector<128x128xf32>, vector<8x128xf32> -> vector<8x128xf32>
    %c3_22 = arith.constant 3 : index
    %c0_23 = arith.constant 0 : index
    %28 = vector.load %arg4[%c3_22, %c0_23] : memref<16x256xf32, #tpu.memory_space<vmem>>, vector<1x128xf32>
    %29 = vector.broadcast %28 : vector<1x128xf32> to vector<8x128xf32>
    %30 = arith.addf %27, %29 : vector<8x128xf32>
    %cst_24 = arith.constant 0.000000e+00 : f32
    %31 = vector.broadcast %cst_24 : f32 to vector<8x128xf32>
    %32 = arith.maximumf %30, %31 : vector<8x128xf32>
    %c4 = arith.constant 4 : index
    %c0_25 = arith.constant 0 : index
    %c0_26 = arith.constant 0 : index
    %33 = vector.load %arg2[%c4, %c0_25, %c0_26] : memref<5x256x128xf32, #tpu.memory_space<vmem>>, vector<1x128x128xf32>
    %34 = vector.shape_cast %33 : vector<1x128x128xf32> to vector<128x128xf32>
    %cst_27 = arith.constant dense<0.000000e+00> : vector<8x128xf32>
    %35 = tpu.matmul %32, %34, %cst_27 {dimension_numbers = #tpu.dot_dimension_numbers<[1], [0], [0], [1], [0, 0, 1, 1], [], []>} : vector<8x128xf32>, vector<128x128xf32>, vector<8x128xf32> -> vector<8x128xf32>
    %c4_28 = arith.constant 4 : index
    %c0_29 = arith.constant 0 : index
    %36 = vector.load %arg4[%c4_28, %c0_29] : memref<16x256xf32, #tpu.memory_space<vmem>>, vector<1x128xf32>
    %37 = vector.broadcast %36 : vector<1x128xf32> to vector<8x128xf32>
    %38 = arith.addf %35, %37 : vector<8x128xf32>
    %c0_30 = arith.constant 0 : index
    %c0_31 = arith.constant 0 : index
    %39 = vector.load %arg6[%c0_30, %c0_31] : memref<8x128xf32, #tpu.memory_space<vmem>>, vector<8x128xf32>
    tpu.vector_store %arg6[%c0_30, %c0_31], %38 {strides = array<i32>} : memref<8x128xf32, #tpu.memory_space<vmem>>, vector<8x128xf32>,
    %c0_32 = arith.constant 0 : index
    %c0_33 = arith.constant 0 : index
    %c0_34 = arith.constant 0 : index
    %40 = vector.load %arg3[%c0_32, %c0_33, %c0_34] : memref<5x128x256xf32, #tpu.memory_space<vmem>>, vector<1x128x128xf32>
    %41 = vector.shape_cast %40 : vector<1x128x128xf32> to vector<128x128xf32>
    %cst_35 = arith.constant dense<0.000000e+00> : vector<8x128xf32>
    %42 = tpu.matmul %38, %41, %cst_35 {dimension_numbers = #tpu.dot_dimension_numbers<[1], [0], [0], [1], [0, 0, 1, 1], [], []>} : vector<8x128xf32>, vector<128x128xf32>, vector<8x128xf32> -> vector<8x128xf32>
    %c5 = arith.constant 5 : index
    %c0_36 = arith.constant 0 : index
    %43 = vector.load %arg4[%c5, %c0_36] : memref<16x256xf32, #tpu.memory_space<vmem>>, vector<1x128xf32>
    %44 = vector.broadcast %43 : vector<1x128xf32> to vector<8x128xf32>
    %45 = arith.addf %42, %44 : vector<8x128xf32>
    %cst_37 = arith.constant 0.000000e+00 : f32
    %46 = vector.broadcast %cst_37 : f32 to vector<8x128xf32>
    %47 = arith.maximumf %45, %46 : vector<8x128xf32>
    %c1_38 = arith.constant 1 : index
    %c0_39 = arith.constant 0 : index
    %c0_40 = arith.constant 0 : index
    %48 = vector.load %arg3[%c1_38, %c0_39, %c0_40] : memref<5x128x256xf32, #tpu.memory_space<vmem>>, vector<1x128x128xf32>
    %49 = vector.shape_cast %48 : vector<1x128x128xf32> to vector<128x128xf32>
    %cst_41 = arith.constant dense<0.000000e+00> : vector<8x128xf32>
    %50 = tpu.matmul %47, %49, %cst_41 {dimension_numbers = #tpu.dot_dimension_numbers<[1], [0], [0], [1], [0, 0, 1, 1], [], []>} : vector<8x128xf32>, vector<128x128xf32>, vector<8x128xf32> -> vector<8x128xf32>
    %c6 = arith.constant 6 : index
    %c0_42 = arith.constant 0 : index
    %51 = vector.load %arg4[%c6, %c0_42] : memref<16x256xf32, #tpu.memory_space<vmem>>, vector<1x128xf32>
    %52 = vector.broadcast %51 : vector<1x128xf32> to vector<8x128xf32>
    %53 = arith.addf %50, %52 : vector<8x128xf32>
    %cst_43 = arith.constant 0.000000e+00 : f32
    %54 = vector.broadcast %cst_43 : f32 to vector<8x128xf32>
    %55 = arith.maximumf %53, %54 : vector<8x128xf32>
    %c2_44 = arith.constant 2 : index
    %c0_45 = arith.constant 0 : index
    %c0_46 = arith.constant 0 : index
    %56 = vector.load %arg3[%c2_44, %c0_45, %c0_46] : memref<5x128x256xf32, #tpu.memory_space<vmem>>, vector<1x128x128xf32>
    %57 = vector.shape_cast %56 : vector<1x128x128xf32> to vector<128x128xf32>
    %cst_47 = arith.constant dense<0.000000e+00> : vector<8x128xf32>
    %58 = tpu.matmul %55, %57, %cst_47 {dimension_numbers = #tpu.dot_dimension_numbers<[1], [0], [0], [1], [0, 0, 1, 1], [], []>} : vector<8x128xf32>, vector<128x128xf32>, vector<8x128xf32> -> vector<8x128xf32>
    %c7 = arith.constant 7 : index
    %c0_48 = arith.constant 0 : index
    %59 = vector.load %arg4[%c7, %c0_48] : memref<16x256xf32, #tpu.memory_space<vmem>>, vector<1x128xf32>
    %60 = vector.broadcast %59 : vector<1x128xf32> to vector<8x128xf32>
    %61 = arith.addf %58, %60 : vector<8x128xf32>
    %cst_49 = arith.constant 0.000000e+00 : f32
    %62 = vector.broadcast %cst_49 : f32 to vector<8x128xf32>
    %63 = arith.maximumf %61, %62 : vector<8x128xf32>
    %c3_50 = arith.constant 3 : index
    %c0_51 = arith.constant 0 : index
    %c0_52 = arith.constant 0 : index
    %64 = vector.load %arg3[%c3_50, %c0_51, %c0_52] : memref<5x128x256xf32, #tpu.memory_space<vmem>>, vector<1x128x128xf32>
    %65 = vector.shape_cast %64 : vector<1x128x128xf32> to vector<128x128xf32>
    %cst_53 = arith.constant dense<0.000000e+00> : vector<8x128xf32>
    %66 = tpu.matmul %63, %65, %cst_53 {dimension_numbers = #tpu.dot_dimension_numbers<[1], [0], [0], [1], [0, 0, 1, 1], [], []>} : vector<8x128xf32>, vector<128x128xf32>, vector<8x128xf32> -> vector<8x128xf32>
    %c8 = arith.constant 8 : index
    %c0_54 = arith.constant 0 : index
    %67 = vector.load %arg4[%c8, %c0_54] : memref<16x256xf32, #tpu.memory_space<vmem>>, vector<1x128xf32>
    %68 = vector.broadcast %67 : vector<1x128xf32> to vector<8x128xf32>
    %69 = arith.addf %66, %68 : vector<8x128xf32>
    %cst_55 = arith.constant 0.000000e+00 : f32
    %70 = vector.broadcast %cst_55 : f32 to vector<8x128xf32>
    %71 = arith.maximumf %69, %70 : vector<8x128xf32>
    %c4_56 = arith.constant 4 : index
    %c0_57 = arith.constant 0 : index
    %c0_58 = arith.constant 0 : index
    %72 = vector.load %arg3[%c4_56, %c0_57, %c0_58] : memref<5x128x256xf32, #tpu.memory_space<vmem>>, vector<1x128x256xf32>
    %73 = vector.shape_cast %72 : vector<1x128x256xf32> to vector<128x256xf32>
    %cst_59 = arith.constant dense<0.000000e+00> : vector<8x256xf32>
    %74 = tpu.matmul %71, %73, %cst_59 {dimension_numbers = #tpu.dot_dimension_numbers<[1], [0], [0], [1], [0, 0, 1, 1], [], []>} : vector<8x128xf32>, vector<128x256xf32>, vector<8x256xf32> -> vector<8x256xf32>
    %c9 = arith.constant 9 : index
    %c0_60 = arith.constant 0 : index
    %75 = vector.load %arg4[%c9, %c0_60] : memref<16x256xf32, #tpu.memory_space<vmem>>, vector<1x256xf32>
    %76 = vector.broadcast %75 : vector<1x256xf32> to vector<8x256xf32>
    %77 = arith.addf %74, %76 : vector<8x256xf32>
    %78 = arith.negf %77 : vector<8x256xf32>
    %79 = math.exp %78 : vector<8x256xf32>
    %cst_61 = arith.constant 1.000000e+00 : f32
    %80 = vector.broadcast %cst_61 : f32 to vector<8x256xf32>
    %81 = arith.addf %80, %79 : vector<8x256xf32>
    %82 = arith.divf %80, %81 : vector<8x256xf32>
    %c0_62 = arith.constant 0 : index
    %c0_63 = arith.constant 0 : index
    %83 = vector.load %arg5[%c0_62, %c0_63] : memref<8x256xf32, #tpu.memory_space<vmem>>, vector<8x256xf32>
    tpu.vector_store %arg5[%c0_62, %c0_63], %82 {strides = array<i32>} : memref<8x256xf32, #tpu.memory_space<vmem>>, vector<8x256xf32>,
    return
  }
  func.func @transform_0(%arg0: i32) -> (i32, i32) {
    %c0_i32 = arith.constant 0 : i32
    %c0_i32_0 = arith.constant 0 : i32
    return %arg0, %c0_i32 : i32, i32
  }
  func.func @transform_1(%arg0: i32) -> (i32, i32, i32) {
    %c0_i32 = arith.constant 0 : i32
    %c0_i32_0 = arith.constant 0 : i32
    %c0_i32_1 = arith.constant 0 : i32
    %c0_i32_2 = arith.constant 0 : i32
    return %c0_i32, %c0_i32_0, %c0_i32_1 : i32, i32, i32
  }
  func.func @transform_2(%arg0: i32) -> (i32, i32, i32) {
    %c0_i32 = arith.constant 0 : i32
    %c0_i32_0 = arith.constant 0 : i32
    %c0_i32_1 = arith.constant 0 : i32
    %c0_i32_2 = arith.constant 0 : i32
    return %c0_i32, %c0_i32_0, %c0_i32_1 : i32, i32, i32
  }
  func.func @transform_3(%arg0: i32) -> (i32, i32) {
    %c0_i32 = arith.constant 0 : i32
    %c0_i32_0 = arith.constant 0 : i32
    %c0_i32_1 = arith.constant 0 : i32
    return %c0_i32, %c0_i32_0 : i32, i32
  }
  func.func @transform_4(%arg0: i32) -> (i32, i32) {
    %c0_i32 = arith.constant 0 : i32
    %c0_i32_0 = arith.constant 0 : i32
    return %arg0, %c0_i32 : i32, i32
  }
  func.func @transform_5(%arg0: i32) -> (i32, i32) {
    %c0_i32 = arith.constant 0 : i32
    %c0_i32_0 = arith.constant 0 : i32
    return %arg0, %c0_i32 : i32, i32
  }
}

</mosaic_0001>

<bundles_post_ra>
// kernel: tpu_custom_call.1
= control target key start
LH: loop header
LB: loop body
LE: loop exit
PB: predicated region body
PF: predicated region fallthrough
CT: control target
= control target key end

     0   :  { %11 = vsyncpa [#allocation3], 0  ;;  %s856_s0 = inlined_call_operand.hbm [shape: f32[8,256], index: 0, kind: input, shape index: {}]   ;;  %s857_s1 = inlined_call_operand.hbm [shape: f32[5,256,128], index: 1, kind: input, shape index: {}]   ;;  %s858_s2 = inlined_call_operand.hbm [shape: f32[5,128,256], index: 2, kind: input, shape index: {}]   ;;  %s859_s3 = inlined_call_operand.hbm [shape: f32[16,256], index: 3, kind: input, shape index: {}]   ;;  %s860_s4 = inlined_call_operand.hbm [shape: f32[8,256], index: 4, kind: output, shape index: {0}]   ;;  %s861_s5 = inlined_call_operand.hbm [shape: f32[8,128], index: 5, kind: output, shape index: {1}]  }
   0x1   :  { %12 = vsyncpa [#allocation6], 0 }
   0x2   :  { %13 = vsyncpa [#allocation9], 0 }
   0x3   :  { %14 = vsyncpa [#allocation4], 0  ;;  %s31_s20 = sshll.u32 %s857_s1, 4  ;;  %s32_s20 = int_to_ptr.hbm [resolvable:$true] %s31_s20 }
   0x4   :  { %15 = vsyncpa [#allocation12], 0  ;;  %s798_s21 = smov [#allocation5]   ;;  %s21_s25 = sshll.u32 %s856_s0, 4  ;;  %s22_s25 = int_to_ptr.hbm [resolvable:$true] %s21_s25 }
   0x5   :  { %s33_s22 = sshll.u32 %s798_s21, 4  ;;  %s799_s26 = smov 128   ;;  %s34_s22 = int_to_ptr.vmem [resolvable:$true] %s33_s22 }
   0x6   :  { %s800_s27 = smov 8   ;;  %s801_s28 = smov [#allocation2]  }
   0x7   :  { %39 = dma.hbm_to_vmem [thread:$0]  %s32_s20, 20480, %s34_s22, [#allocation6], %s799_s26, %s799_s26, %s800_s27  }
   0x8   :  { %s23_s29 = sshll.u32 %s801_s28, 4  ;;  %s44_s7 = sshll.u32 %s858_s2, 4  ;;  %s24_s29 = int_to_ptr.vmem [resolvable:$true] %s23_s29  ;;  %s45_s7 = int_to_ptr.hbm [resolvable:$true] %s44_s7 }
   0x9   :  { %26 = dma.hbm_to_vmem [thread:$0]  %s22_s25, 256, %s24_s29, [#allocation3]  }
   0xa   :  { %s802_s1 = smov [#allocation7]   ;;  %s57_s0 = sshll.u32 %s859_s3, 4  ;;  %s58_s0 = int_to_ptr.hbm [resolvable:$true] %s57_s0 }
   0xb   :  { %s46_s8 = sshll.u32 %s802_s1, 4  ;;  %s803_s11 = smov 256   ;;  %s47_s8 = int_to_ptr.vmem [resolvable:$true] %s46_s8 }
   0xc   :  { %s804_s12 = smov 16   ;;  %s805_s13 = smov [#allocation8]  }
   0xd   :  { %52 = dma.hbm_to_vmem [thread:$0]  %s45_s7, 20480, %s47_s8, [#allocation6], %s803_s11, %s803_s11, %s804_s12  }
   0xe   :  { %s59_s14 = sshll.u32 %s805_s13, 4  ;;  %s60_s14 = int_to_ptr.vmem [resolvable:$true] %s59_s14 }
   0xf   :  { %65 = dma.hbm_to_vmem [thread:$0]  %s58_s0, 512, %s60_s14, [#allocation9], %s803_s11, %s803_s11, %s804_s12  }
  0x10   :  { %788 = dma.done.wait [#allocation3], 256  }
  0x11   :  { %789 = vsyncadd [#allocation3], 4294967040 }
  0x12   :  { %790 = dma.done.wait [#allocation6], 40960  }
  0x13   :  { %791 = vsyncadd [#allocation6], 4294926336 }
  0x14   :  { %792 = dma.done.wait [#allocation9], 512  }
  0x15   :  { %793 = vsyncadd [#allocation9], 4294966784  ;;  %v99_v0 = vld [vmem:[#allocation5 + $0x78] sm:$0xff]  ;;  %v98_v1 = vld [vmem:[#allocation5 + $0x70] sm:$0xff]  ;;  %s806_s2 = smov [#allocation11]   ;;  %s607_s17 = sshll.u32 %s861_s5, 4  ;;  %s608_s17 = int_to_ptr.hbm [resolvable:$true] %s607_s17 }
  0x16   :  { %v115_v2 = vld [vmem:[#allocation5 + $0xf8] sm:$0xff]  ;;  %117 = vmatpush.msra.mxu0 %v99_v0  ;;  %v114_v3 = vld [vmem:[#allocation5 + $0xf0] sm:$0xff]  ;;  %v97_v4 = vld [vmem:[#allocation5 + $0x68] sm:$0xff]  ;;  %s605_s3 = sshll.u32 %s806_s2, 4  ;;  %s807_s5 = smov [#allocation10]   ;;  %s606_s3 = int_to_ptr.vmem [resolvable:$true] %s605_s3 }
  0x17   :  { %137 = vmatpush.msra.mxu1 %v115_v2  ;;  %v113_v5 = vld [vmem:[#allocation5 + $0xe8] sm:$0xff]  ;;  %v96_v6 = vld [vmem:[#allocation5 + $0x60] sm:$0xff]  ;;  %v95_v8 = vld [vmem:[#allocation5 + $0x58] sm:$0xff]  ;;  %s594_s18 = sshll.u32 %s807_s5, 4  ;;  %s596_s21 = sshll.u32 %s860_s4, 4  ;;  %s595_s18 = int_to_ptr.vmem [resolvable:$true] %s594_s18  ;;  %s597_s21 = int_to_ptr.hbm [resolvable:$true] %s596_s21 }
  0x18   :  { %118 = vmatpush.msra.mxu0 %v98_v1  ;;  %v112_v7 = vld [vmem:[#allocation5 + $0xe0] sm:$0xff]  ;;  %v111_v9 = vld [vmem:[#allocation5 + $0xd8] sm:$0xff]  ;;  %v94_v10 = vld [vmem:[#allocation5 + $0x50] sm:$0xff] }
  0x19   :  { %138 = vmatpush.msra.mxu1 %v114_v3  ;;  %v110_v11 = vld [vmem:[#allocation5 + $0xd0] sm:$0xff]  ;;  %v93_v12 = vld [vmem:[#allocation5 + $0x48] sm:$0xff]  ;;  %v174_v14 = vld [vmem:[#allocation5 + $0x178] sm:$0xff] }
  0x1a   :  { %119 = vmatpush.msra.mxu0 %v97_v4  ;;  %v109_v13 = vld [vmem:[#allocation5 + $0xc8] sm:$0xff]  ;;  %v173_v15 = vld [vmem:[#allocation5 + $0x170] sm:$0xff]  ;;  %v92_v16 = vld [vmem:[#allocation5 + $0x40] sm:$0xff]  ;;  %176 = vmatpush.msra.mxu2 %v174_v14 }
  0x1b   :  { %139 = vmatpush.msra.mxu1 %v113_v5  ;;  %v108_v17 = vld [vmem:[#allocation5 + $0xc0] sm:$0xff]  ;;  %v172_v18 = vld [vmem:[#allocation5 + $0x168] sm:$0xff]  ;;  %v91_v19 = vld [vmem:[#allocation5 + $0x38] sm:$0xff] }
  0x1c   :  { %120 = vmatpush.msra.mxu0 %v96_v6  ;;  %v107_v20 = vld [vmem:[#allocation5 + $0xb8] sm:$0xff]  ;;  %177 = vmatpush.msra.mxu2 %v173_v15  ;;  %v171_v21 = vld [vmem:[#allocation5 + $0x160] sm:$0xff]  ;;  %v90_v22 = vld [vmem:[#allocation5 + $0x30] sm:$0xff] }
  0x1d   :  { %140 = vmatpush.msra.mxu1 %v112_v7  ;;  %v106_v23 = vld [vmem:[#allocation5 + $0xb0] sm:$0xff]  ;;  %v170_v24 = vld [vmem:[#allocation5 + $0x158] sm:$0xff]  ;;  %v89_v25 = vld [vmem:[#allocation5 + $0x28] sm:$0xff] }
  0x1e   :  { %121 = vmatpush.msra.mxu0 %v95_v8  ;;  %178 = vmatpush.msra.mxu2 %v172_v18  ;;  %v105_v26 = vld [vmem:[#allocation5 + $0xa8] sm:$0xff]  ;;  %v169_v27 = vld [vmem:[#allocation5 + $0x150] sm:$0xff]  ;;  %v88_v28 = vld [vmem:[#allocation5 + $0x20] sm:$0xff] }
  0x1f   :  { %141 = vmatpush.msra.mxu1 %v111_v9  ;;  %v104_v29 = vld [vmem:[#allocation5 + $0xa0] sm:$0xff]  ;;  %v168_v30 = vld [vmem:[#allocation5 + $0x148] sm:$0xff]  ;;  %v87_v31 = vld [vmem:[#allocation5 + $0x18] sm:$0xff] }
  0x20   :  { %122 = vmatpush.msra.mxu0 %v94_v10  ;;  %179 = vmatpush.msra.mxu2 %v171_v21  ;;  %v103_v32 = vld [vmem:[#allocation5 + $0x98] sm:$0xff]  ;;  %v167_v33 = vld [vmem:[#allocation5 + $0x140] sm:$0xff]  ;;  %v86_v34 = vld [vmem:[#allocation5 + $0x10] sm:$0xff] }
  0x21   :  { %142 = vmatpush.msra.mxu1 %v110_v11  ;;  %v102_v35 = vld [vmem:[#allocation5 + $0x90] sm:$0xff]  ;;  %v166_v36 = vld [vmem:[#allocation5 + $0x138] sm:$0xff]  ;;  %v85_v37 = vld [vmem:[#allocation5 + $0x8] sm:$0xff] }
  0x22   :  { %123 = vmatpush.msra.mxu0 %v93_v12  ;;  %180 = vmatpush.msra.mxu2 %v170_v24  ;;  %v101_v38 = vld [vmem:[#allocation5 + $0x88] sm:$0xff]  ;;  %v165_v39 = vld [vmem:[#allocation5 + $0x130] sm:$0xff]  ;;  %v84_v40 = vld [vmem:[#allocation5] sm:$0xff] }
  0x23   :  { %143 = vmatpush.msra.mxu1 %v109_v13  ;;  %v100_v41 = vld [vmem:[#allocation5 + $0x80] sm:$0xff]  ;;  %v82_v42 = vld [vmem:[#allocation2] sm:$0xff]  ;;  %v83_v43 = vld [vmem:[#allocation2 + $0x8] sm:$0xff] }
  0x24   :  { %124 = vmatpush.msra.mxu0 %v92_v16  ;;  %181 = vmatpush.msra.mxu2 %v169_v27  ;;  %v164_v44 = vld [vmem:[#allocation5 + $0x128] sm:$0xff]  ;;  %v163_v45 = vld [vmem:[#allocation5 + $0x120] sm:$0xff]  ;;  %v162_v46 = vld [vmem:[#allocation5 + $0x118] sm:$0xff] }
  0x25   :  { %144 = vmatpush.msra.mxu1 %v108_v17  ;;  %v161_v47 = vld [vmem:[#allocation5 + $0x110] sm:$0xff]  ;;  %v160_v48 = vld [vmem:[#allocation5 + $0x108] sm:$0xff]  ;;  %v159_v49 = vld [vmem:[#allocation5 + $0x100] sm:$0xff] }
  0x26   :  { %125 = vmatpush.msra.mxu0 %v91_v19  ;;  %182 = vmatpush.msra.mxu2 %v168_v30  ;;  %v213_v50 = vld [vmem:[#allocation5 + $0x278] sm:$0xff]  ;;  %v212_v51 = vld [vmem:[#allocation5 + $0x270] sm:$0xff]  ;;  %v211_v52 = vld [vmem:[#allocation5 + $0x268] sm:$0xff] }
  0x27   :  { %145 = vmatpush.msra.mxu1 %v107_v20  ;;  %215 = vmatpush.msra.mxu3 %v213_v50  ;;  %v210_v53 = vld [vmem:[#allocation5 + $0x260] sm:$0xff]  ;;  %v209_v54 = vld [vmem:[#allocation5 + $0x258] sm:$0xff]  ;;  %v208_v55 = vld [vmem:[#allocation5 + $0x250] sm:$0xff] }
  0x28   :  { %126 = vmatpush.msra.mxu0 %v90_v22  ;;  %183 = vmatpush.msra.mxu2 %v167_v33  ;;  %v207_v56 = vld [vmem:[#allocation5 + $0x248] sm:$0xff]  ;;  %v206_v57 = vld [vmem:[#allocation5 + $0x240] sm:$0xff]  ;;  %v205_v58 = vld [vmem:[#allocation5 + $0x238] sm:$0xff] }
  0x29   :  { %146 = vmatpush.msra.mxu1 %v106_v23  ;;  %216 = vmatpush.msra.mxu3 %v212_v51  ;;  %v204_v59 = vld [vmem:[#allocation5 + $0x230] sm:$0xff]  ;;  %v203_v60 = vld [vmem:[#allocation5 + $0x228] sm:$0xff]  ;;  %v202_v61 = vld [vmem:[#allocation5 + $0x220] sm:$0xff] }
  0x2a   :  { %127 = vmatpush.msra.mxu0 %v89_v25  ;;  %184 = vmatpush.msra.mxu2 %v166_v36  ;;  %v201_v62 = vld [vmem:[#allocation5 + $0x218] sm:$0xff]  ;;  %v116_v63 = vld [vmem:[#allocation8] ss:$0 sm:$0xff]  ;;  %v200_v5 = vld [vmem:[#allocation5 + $0x210] sm:$0xff] }
  0x2b   :  { %147 = vmatpush.msra.mxu1 %v105_v26  ;;  %217 = vmatpush.msra.mxu3 %v211_v52  ;;  %v199_v6 = vld [vmem:[#allocation5 + $0x208] sm:$0xff]  ;;  %v198_v7 = vld [vmem:[#allocation5 + $0x200] sm:$0xff]  ;;  %v252_v8 = vld [vmem:[#allocation5 + $0x378] sm:$0xff] }
  0x2c   :  { %128 = vmatpush.msra.mxu0 %v88_v28  ;;  %185 = vmatpush.msra.mxu2 %v165_v39  ;;  %v251_v9 = vld [vmem:[#allocation5 + $0x370] sm:$0xff]  ;;  %v250_v10 = vld [vmem:[#allocation5 + $0x368] sm:$0xff]  ;;  %v249_v11 = vld [vmem:[#allocation5 + $0x360] sm:$0xff] }
  0x2d   :  { %148 = vmatpush.msra.mxu1 %v104_v29  ;;  %218 = vmatpush.msra.mxu3 %v210_v53  ;;  %v248_v12 = vld [vmem:[#allocation5 + $0x358] sm:$0xff]  ;;  %v247_v13 = vld [vmem:[#allocation5 + $0x350] sm:$0xff]  ;;  %v246_v14 = vld [vmem:[#allocation5 + $0x348] sm:$0xff] }
  0x2e   :  { %129 = vmatpush.msra.mxu0 %v87_v31  ;;  %186 = vmatpush.msra.mxu2 %v164_v44  ;;  %v245_v15 = vld [vmem:[#allocation5 + $0x340] sm:$0xff]  ;;  %v244_v16 = vld [vmem:[#allocation5 + $0x338] sm:$0xff]  ;;  %v243_v17 = vld [vmem:[#allocation5 + $0x330] sm:$0xff] }
  0x2f   :  { %149 = vmatpush.msra.mxu1 %v103_v32  ;;  %219 = vmatpush.msra.mxu3 %v209_v54  ;;  %v242_v18 = vld [vmem:[#allocation5 + $0x328] sm:$0xff]  ;;  %v241_v19 = vld [vmem:[#allocation5 + $0x320] sm:$0xff]  ;;  %v240_v20 = vld [vmem:[#allocation5 + $0x318] sm:$0xff] }
  0x30   :  { %130 = vmatpush.msra.mxu0 %v86_v34  ;;  %187 = vmatpush.msra.mxu2 %v163_v45  ;;  %v175_v21 = vld [vmem:[#allocation8 + $0x1] ss:$0 sm:$0xff]  ;;  %v239_v25 = vld [vmem:[#allocation5 + $0x310] sm:$0xff]  ;;  %v238_v26 = vld [vmem:[#allocation5 + $0x308] sm:$0xff] }
  0x31   :  { %150 = vmatpush.msra.mxu1 %v102_v35  ;;  %220 = vmatpush.msra.mxu3 %v208_v55  ;;  %v237_v27 = vld [vmem:[#allocation5 + $0x300] sm:$0xff]  ;;  %v291_v28 = vld [vmem:[#allocation5 + $0x478] sm:$0xff]  ;;  %v290_v29 = vld [vmem:[#allocation5 + $0x470] sm:$0xff] }
  0x32   :  { %131 = vmatpush.msra.mxu0 %v85_v37  ;;  %188 = vmatpush.msra.mxu2 %v162_v46  ;;  %v289_v30 = vld [vmem:[#allocation5 + $0x468] sm:$0xff]  ;;  %v288_v31 = vld [vmem:[#allocation5 + $0x460] sm:$0xff]  ;;  %v287_v32 = vld [vmem:[#allocation5 + $0x458] sm:$0xff] }
  0x33   :  { %151 = vmatpush.msra.mxu1 %v101_v38  ;;  %221 = vmatpush.msra.mxu3 %v207_v56  ;;  %v286_v33 = vld [vmem:[#allocation5 + $0x450] sm:$0xff]  ;;  %v285_v34 = vld [vmem:[#allocation5 + $0x448] sm:$0xff]  ;;  %v284_v35 = vld [vmem:[#allocation5 + $0x440] sm:$0xff] }
  0x34   :  { %132 = vmatpush.msra.mxu0 %v84_v40  ;;  %189 = vmatpush.msra.mxu2 %v161_v47  ;;  %v283_v36 = vld [vmem:[#allocation5 + $0x438] sm:$0xff]  ;;  %v282_v37 = vld [vmem:[#allocation5 + $0x430] sm:$0xff]  ;;  %v281_v38 = vld [vmem:[#allocation5 + $0x428] sm:$0xff] }
  0x35   :  { %152 = vmatpush.msra.mxu1 %v100_v41  ;;  %133 = vmatmul.f32.vlgmr.msra.gmra.mxu0 %v82_v42  ;;  %v280_v39 = vld [vmem:[#allocation5 + $0x420] sm:$0xff]  ;;  %v279_v40 = vld [vmem:[#allocation5 + $0x418] sm:$0xff]  ;;  %v278_v45 = vld [vmem:[#allocation5 + $0x410] sm:$0xff] }
  0x36   :  { %153 = vmatmul.f32.vlgmr.msra.gmra.mxu1 %v83_v43  ;;  %190 = vmatpush.msra.mxu2 %v160_v48  ;;  %v214_v41 = vld [vmem:[#allocation8 + $0x2] ss:$0 sm:$0xff]  ;;  %v277_v46 = vld [vmem:[#allocation5 + $0x408] sm:$0xff]  ;;  %v329_v48 = vld [vmem:[#allocation7 + $0xf0] sm:$0xff] }
  0x37   :  { %222 = vmatpush.msra.mxu3 %v206_v57  ;;  %254 = vmatpush.msrb.mxu0 %v252_v8  ;;  %v276_v47 = vld [vmem:[#allocation5 + $0x400] sm:$0xff]  ;;  %v327_v50 = vld [vmem:[#allocation7 + $0xd0] sm:$0xff] }
  0x38   :  { %191 = vmatpush.msra.mxu2 %v159_v49  ;;  %293 = vmatpush.msrb.mxu1 %v291_v28  ;;  %v328_v49 = vld [vmem:[#allocation7 + $0xe0] sm:$0xff]  ;;  %v325_v52 = vld [vmem:[#allocation7 + $0xb0] sm:$0xff] }
  0x39   :  { %223 = vmatpush.msra.mxu3 %v205_v58  ;;  %255 = vmatpush.msrb.mxu0 %v251_v9  ;;  %v326_v51 = vld [vmem:[#allocation7 + $0xc0] sm:$0xff]  ;;  %v323_v54 = vld [vmem:[#allocation7 + $0x90] sm:$0xff] }
  0x3a   :  { %294 = vmatpush.msrb.mxu1 %v290_v29  ;;  %331 = vmatpush.msrb.mxu2 %v329_v48  ;;  %v324_v53 = vld [vmem:[#allocation7 + $0xa0] sm:$0xff]  ;;  %v321_v56 = vld [vmem:[#allocation7 + $0x70] sm:$0xff] }
  0x3b   :  { %224 = vmatpush.msra.mxu3 %v204_v59  ;;  %256 = vmatpush.msrb.mxu0 %v250_v10  ;;  %v322_v55 = vld [vmem:[#allocation7 + $0x80] sm:$0xff]  ;;  %v319_v58 = vld [vmem:[#allocation7 + $0x50] sm:$0xff] }
  0x3c   :  { %295 = vmatpush.msrb.mxu1 %v289_v30  ;;  %332 = vmatpush.msrb.mxu2 %v328_v49  ;;  %v320_v57 = vld [vmem:[#allocation7 + $0x60] sm:$0xff]  ;;  %v364_v8 = vld [vmem:[#allocation7 + $0x1b0] sm:$0xff] }
  0x3d   :  { %225 = vmatpush.msra.mxu3 %v203_v60  ;;  %257 = vmatpush.msrb.mxu0 %v249_v11  ;;  %v318_v59 = vld [vmem:[#allocation7 + $0x40] sm:$0xff]  ;;  %v317_v60 = vld [vmem:[#allocation7 + $0x30] sm:$0xff] }
  0x3e   :  { %296 = vmatpush.msrb.mxu1 %v288_v31  ;;  %333 = vmatpush.msrb.mxu2 %v327_v50  ;;  %v363_v9 = vld [vmem:[#allocation7 + $0x1a0] sm:$0xff]  ;;  %v362_v10 = vld [vmem:[#allocation7 + $0x190] sm:$0xff] }
  0x3f   :  { %226 = vmatpush.msra.mxu3 %v202_v61  ;;  %258 = vmatpush.msrb.mxu0 %v248_v12  ;;  %v316_v61 = vld [vmem:[#allocation7 + $0x20] sm:$0xff]  ;;  %v360_v12 = vld [vmem:[#allocation7 + $0x170] sm:$0xff] }
  0x40   :  { %297 = vmatpush.msrb.mxu1 %v287_v32  ;;  %334 = vmatpush.msrb.mxu2 %v326_v51  ;;  %v361_v11 = vld [vmem:[#allocation7 + $0x180] sm:$0xff]  ;;  %v401_v29 = vld [vmem:[#allocation7 + $0x290] sm:$0xff] }
  0x41   :  { %227 = vmatpush.msra.mxu3 %v201_v62  ;;  %259 = vmatpush.msrb.mxu0 %v247_v13  ;;  %v253_v62 = vld [vmem:[#allocation8 + $0x3] ss:$0 sm:$0xff]  ;;  %v399_v31 = vld [vmem:[#allocation7 + $0x270] sm:$0xff] }
  0x42   :  { %298 = vmatpush.msrb.mxu1 %v286_v33  ;;  %335 = vmatpush.msrb.mxu2 %v325_v52  ;;  %v359_v13 = vld [vmem:[#allocation7 + $0x160] sm:$0xff]  ;;  %v397_v33 = vld [vmem:[#allocation7 + $0x250] sm:$0xff] }
  0x43   :  { %228 = vmatpush.msra.mxu3 %v200_v5  ;;  %260 = vmatpush.msrb.mxu0 %v246_v14  ;;  %v367_v5 = vld [vmem:[#allocation7 + $0x1e0] sm:$0xff]  ;;  %v358_v14 = vld [vmem:[#allocation7 + $0x150] sm:$0xff] }
  0x44   :  { %299 = vmatpush.msrb.mxu1 %v285_v34  ;;  %336 = vmatpush.msrb.mxu2 %v324_v53  ;;  %v402_v28 = vld [vmem:[#allocation7 + $0x2a0] sm:$0xff]  ;;  %v440_v49 = vld [vmem:[#allocation7 + $0x390] sm:$0xff] }
  0x45   :  { %229 = vmatpush.msra.mxu3 %v199_v6  ;;  %261 = vmatpush.msrb.mxu0 %v245_v15  ;;  %v366_v6 = vld [vmem:[#allocation7 + $0x1d0] sm:$0xff]  ;;  %v357_v15 = vld [vmem:[#allocation7 + $0x140] sm:$0xff] }
  0x46   :  { %300 = vmatpush.msrb.mxu1 %v284_v35  ;;  %337 = vmatpush.msrb.mxu2 %v323_v54  ;;  %v400_v30 = vld [vmem:[#allocation7 + $0x280] sm:$0xff]  ;;  %v395_v35 = vld [vmem:[#allocation7 + $0x230] sm:$0xff] }
  0x47   :  { %230 = vmatpush.msra.mxu3 %v198_v7  ;;  %262 = vmatpush.msrb.mxu0 %v244_v16  ;;  %v365_v7 = vld [vmem:[#allocation7 + $0x1c0] sm:$0xff]  ;;  %v356_v16 = vld [vmem:[#allocation7 + $0x130] sm:$0xff] }
  0x48   :  { %301 = vmatpush.msrb.mxu1 %v283_v36  ;;  %338 = vmatpush.msrb.mxu2 %v322_v55  ;;  %v398_v32 = vld [vmem:[#allocation7 + $0x260] sm:$0xff]  ;;  %v438_v51 = vld [vmem:[#allocation7 + $0x370] sm:$0xff] }
  0x49   :  { %263 = vmatpush.msrb.mxu0 %v243_v17  ;;  %v292_v17 = vld [vmem:[#allocation8 + $0x4] ss:$0 sm:$0xff]  ;;  %v330_v36 = vld [vmem:[#allocation8 + $0x5] ss:$0 sm:$0xff]  ;;  %v436_v53 = vld [vmem:[#allocation7 + $0x350] sm:$0xff] }
  0x4a   :  { %302 = vmatpush.msrb.mxu1 %v282_v37  ;;  %339 = vmatpush.msrb.mxu2 %v321_v56  ;;  %v396_v34 = vld [vmem:[#allocation7 + $0x240] sm:$0xff]  ;;  %v434_v55 = vld [vmem:[#allocation7 + $0x330] sm:$0xff] }
  0x4b   :  { %264 = vmatpush.msrb.mxu0 %v242_v18  ;;  %v441_v48 = vld [vmem:[#allocation7 + $0x3a0] sm:$0xff] }
  0x4c   :  { %303 = vmatpush.msrb.mxu1 %v281_v38  ;;  %340 = vmatpush.msrb.mxu2 %v320_v57  ;;  %v439_v50 = vld [vmem:[#allocation7 + $0x380] sm:$0xff] }
  0x4d   :  { %265 = vmatpush.msrb.mxu0 %v241_v19  ;;  %v437_v52 = vld [vmem:[#allocation7 + $0x360] sm:$0xff] }
  0x4e   :  { %304 = vmatpush.msrb.mxu1 %v280_v39  ;;  %341 = vmatpush.msrb.mxu2 %v319_v58  ;;  %v435_v54 = vld [vmem:[#allocation7 + $0x340] sm:$0xff] }
  0x4f   :  { %266 = vmatpush.msrb.mxu0 %v240_v20  ;;  %v355_v20 = vld [vmem:[#allocation7 + $0x120] sm:$0xff] }
  0x50   :  { %305 = vmatpush.msrb.mxu1 %v279_v40  ;;  %342 = vmatpush.msrb.mxu2 %v318_v59  ;;  %v394_v40 = vld [vmem:[#allocation7 + $0x220] sm:$0xff] }
  0x51   :  { %267 = vmatpush.msrb.mxu0 %v239_v25  ;;  %v405_v25 = vld [vmem:[#allocation7 + $0x2d0] sm:$0xff]  ;;  %v369_v56 = vld [vmem:[#allocation8 + $0x6] ss:$0 sm:$0xff] }
  0x52   :  { %306 = vmatpush.msrb.mxu1 %v278_v45  ;;  %343 = vmatpush.msrb.mxu2 %v317_v60  ;;  %v444_v45 = vld [vmem:[#allocation7 + $0x3d0] sm:$0xff]  ;;  %v433_v60 = vld [vmem:[#allocation7 + $0x320] sm:$0xff] }
  0x53   :  { %268 = vmatpush.msrb.mxu0 %v238_v26  ;;  %v404_v26 = vld [vmem:[#allocation7 + $0x2c0] sm:$0xff] }
  0x54   :  { %307 = vmatpush.msrb.mxu1 %v277_v46  ;;  %344 = vmatpush.msrb.mxu2 %v316_v61  ;;  %v443_v46 = vld [vmem:[#allocation7 + $0x3c0] sm:$0xff]  ;;  %v432_v61 = vld [vmem:[#allocation7 + $0x310] sm:$0xff] }
  0x55   :  { %269 = vmatpush.msrb.mxu0 %v237_v27  ;;  %v403_v27 = vld [vmem:[#allocation7 + $0x2b0] sm:$0xff] }
  0x56   :  { %308 = vmatpush.msrb.mxu1 %v276_v47  ;;  %v442_v47 = vld [vmem:[#allocation7 + $0x3b0] sm:$0xff] }
  0xb2   :  { %v134_v0 = vpop.f32.mrf.mxu0 }
  0xb3   :  { %v154_v1 = vpop.f32.mrf.mxu1  ;;  %v135_v2 = vadd.f32 %v134_v0, %v116_v63 }
  0xb5   :  { %v155_v3 = vadd.f32 %v154_v1, %v135_v2  ;;  %v315_v2 = vld [vmem:[#allocation7 + $0x10] sm:$0xff] }
  0xb6   :  { %345 = vmatpush.msrb.mxu2 %v315_v2  ;;  %v499_v2 = vld [vmem:[#allocation7 + $0x4e8] sm:$0xff] }
  0xb7   :  { %v157_v4 = vmax.f32 %v155_v3, 0.0  ;;  %v314_v3 = vld [vmem:[#allocation7] sm:$0xff] }
  0xb8   :  { %346 = vmatpush.msrb.mxu2 %v314_v3  ;;  %v496_v3 = vld [vmem:[#allocation7 + $0x4d0] sm:$0xff] }
  0xb9   :  { %192 = vmatmul.f32.vlgmr.msra.gmra.mxu2 %v157_v4  ;;  %v368_v4 = vld [vmem:[#allocation7 + $0x1f0] sm:$0xff] }
  0xba   :  { %370 = vmatpush.msrb.mxu3 %v368_v4  ;;  %v497_v4 = vld [vmem:[#allocation7 + $0x4d8] sm:$0xff] }
  0xbc   :  { %371 = vmatpush.msrb.mxu3 %v367_v5  ;;  %v494_v5 = vld [vmem:[#allocation7 + $0x4c0] sm:$0xff] }
  0xbe   :  { %372 = vmatpush.msrb.mxu3 %v366_v6  ;;  %v495_v6 = vld [vmem:[#allocation7 + $0x4c8] sm:$0xff] }
  0xc0   :  { %373 = vmatpush.msrb.mxu3 %v365_v7  ;;  %v492_v7 = vld [vmem:[#allocation7 + $0x4b0] sm:$0xff] }
  0xc2   :  { %374 = vmatpush.msrb.mxu3 %v364_v8  ;;  %v493_v8 = vld [vmem:[#allocation7 + $0x4b8] sm:$0xff] }
  0xc4   :  { %375 = vmatpush.msrb.mxu3 %v363_v9  ;;  %v490_v9 = vld [vmem:[#allocation7 + $0x4a0] sm:$0xff] }
  0xc6   :  { %376 = vmatpush.msrb.mxu3 %v362_v10  ;;  %v491_v10 = vld [vmem:[#allocation7 + $0x4a8] sm:$0xff] }
  0xc8   :  { %377 = vmatpush.msrb.mxu3 %v361_v11  ;;  %v488_v11 = vld [vmem:[#allocation7 + $0x490] sm:$0xff] }
  0xca   :  { %378 = vmatpush.msrb.mxu3 %v360_v12  ;;  %v489_v12 = vld [vmem:[#allocation7 + $0x498] sm:$0xff] }
  0xcc   :  { %379 = vmatpush.msrb.mxu3 %v359_v13  ;;  %v486_v13 = vld [vmem:[#allocation7 + $0x480] sm:$0xff] }
  0xce   :  { %380 = vmatpush.msrb.mxu3 %v358_v14  ;;  %v487_v14 = vld [vmem:[#allocation7 + $0x488] sm:$0xff] }
  0xd0   :  { %381 = vmatpush.msrb.mxu3 %v357_v15  ;;  %v484_v15 = vld [vmem:[#allocation7 + $0x470] sm:$0xff] }
  0xd2   :  { %382 = vmatpush.msrb.mxu3 %v356_v16  ;;  %v485_v16 = vld [vmem:[#allocation7 + $0x478] sm:$0xff] }
  0xd4   :  { %383 = vmatpush.msrb.mxu3 %v355_v20  ;;  %v481_v20 = vld [vmem:[#allocation7 + $0x458] sm:$0xff] }
 0x13c   :  { %v193_v22 = vpop.f32.mrf.mxu2 }
 0x13d   :  { %v194_v23 = vadd.f32 %v193_v22, %v175_v21  ;;  %v354_v21 = vld [vmem:[#allocation7 + $0x110] sm:$0xff]  ;;  %v353_v22 = vld [vmem:[#allocation7 + $0x100] sm:$0xff] }
 0x13e   :  { %384 = vmatpush.msrb.mxu3 %v354_v21  ;;  %v478_v21 = vld [vmem:[#allocation7 + $0x440] sm:$0xff] }
 0x13f   :  { %v196_v24 = vmax.f32 %v194_v23, 0.0  ;;  %v407_v23 = vld [vmem:[#allocation7 + $0x2f0] sm:$0xff] }
 0x140   :  { %385 = vmatpush.msrb.mxu3 %v353_v22  ;;  %409 = vmatpush.msra.mxu0 %v407_v23  ;;  %v479_v22 = vld [vmem:[#allocation7 + $0x448] sm:$0xff]  ;;  %v476_v23 = vld [vmem:[#allocation7 + $0x430] sm:$0xff] }
 0x141   :  { %231 = vmatmul.f32.vlgmr.msra.gmra.mxu3 %v196_v24  ;;  %v406_v24 = vld [vmem:[#allocation7 + $0x2e0] sm:$0xff] }
 0x142   :  { %410 = vmatpush.msra.mxu0 %v406_v24  ;;  %v477_v24 = vld [vmem:[#allocation7 + $0x438] sm:$0xff] }
 0x144   :  { %411 = vmatpush.msra.mxu0 %v405_v25  ;;  %v408_v25 = vld [vmem:[#allocation8 + $0x7] ss:$0 sm:$0xff] }
 0x146   :  { %412 = vmatpush.msra.mxu0 %v404_v26 }
 0x148   :  { %413 = vmatpush.msra.mxu0 %v403_v27 }
 0x14a   :  { %414 = vmatpush.msra.mxu0 %v402_v28 }
 0x14c   :  { %415 = vmatpush.msra.mxu0 %v401_v29  ;;  %v474_v29 = vld [vmem:[#allocation7 + $0x420] sm:$0xff] }
 0x14e   :  { %416 = vmatpush.msra.mxu0 %v400_v30  ;;  %v475_v30 = vld [vmem:[#allocation7 + $0x428] sm:$0xff] }
 0x150   :  { %417 = vmatpush.msra.mxu0 %v399_v31  ;;  %v472_v31 = vld [vmem:[#allocation7 + $0x410] sm:$0xff] }
 0x152   :  { %418 = vmatpush.msra.mxu0 %v398_v32  ;;  %v473_v32 = vld [vmem:[#allocation7 + $0x418] sm:$0xff] }
 0x154   :  { %419 = vmatpush.msra.mxu0 %v397_v33  ;;  %v470_v33 = vld [vmem:[#allocation7 + $0x400] sm:$0xff] }
 0x156   :  { %420 = vmatpush.msra.mxu0 %v396_v34  ;;  %v471_v34 = vld [vmem:[#allocation7 + $0x408] sm:$0xff] }
 0x158   :  { %421 = vmatpush.msra.mxu0 %v395_v35  ;;  %v447_v35 = vld [vmem:[#allocation8 + $0x10] ss:$0 sm:$0xff] }
 0x15a   :  { %422 = vmatpush.msra.mxu0 %v394_v40 }
 0x1c4   :  { %v232_v42 = vpop.f32.mrf.mxu3 }
 0x1c5   :  { %v233_v43 = vadd.f32 %v232_v42, %v214_v41  ;;  %v393_v41 = vld [vmem:[#allocation7 + $0x210] sm:$0xff]  ;;  %v392_v42 = vld [vmem:[#allocation7 + $0x200] sm:$0xff] }
 0x1c6   :  { %423 = vmatpush.msra.mxu0 %v393_v41 }
 0x1c7   :  { %v235_v44 = vmax.f32 %v233_v43, 0.0  ;;  %v446_v43 = vld [vmem:[#allocation7 + $0x3f0] sm:$0xff] }
 0x1c8   :  { %424 = vmatpush.msra.mxu0 %v392_v42  ;;  %448 = vmatpush.msra.mxu1 %v446_v43 }
 0x1c9   :  { %270 = vmatmul.f32.vlgmr.msrb.gmra.mxu0 %v235_v44  ;;  %v445_v44 = vld [vmem:[#allocation7 + $0x3e0] sm:$0xff] }
 0x1ca   :  { %449 = vmatpush.msra.mxu1 %v445_v44 }
 0x1cc   :  { %450 = vmatpush.msra.mxu1 %v444_v45 }
 0x1ce   :  { %451 = vmatpush.msra.mxu1 %v443_v46 }
 0x1d0   :  { %452 = vmatpush.msra.mxu1 %v442_v47 }
 0x1d2   :  { %453 = vmatpush.msra.mxu1 %v441_v48 }
 0x1d4   :  { %454 = vmatpush.msra.mxu1 %v440_v49 }
 0x1d6   :  { %455 = vmatpush.msra.mxu1 %v439_v50 }
 0x1d8   :  { %456 = vmatpush.msra.mxu1 %v438_v51 }
 0x1da   :  { %457 = vmatpush.msra.mxu1 %v437_v52 }
 0x1dc   :  { %458 = vmatpush.msra.mxu1 %v436_v53 }
 0x1de   :  { %459 = vmatpush.msra.mxu1 %v435_v54 }
 0x1e0   :  { %460 = vmatpush.msra.mxu1 %v434_v55 }
 0x1e2   :  { %461 = vmatpush.msra.mxu1 %v433_v60 }
 0x1e4   :  { %462 = vmatpush.msra.mxu1 %v432_v61 }
 0x246   :  { %v271_v63 = vpop.f32.mrf.mxu0 }
 0x247   :  { %v272_v0 = vadd.f32 %v271_v63, %v253_v62  ;;  %v431_v62 = vld [vmem:[#allocation7 + $0x300] sm:$0xff]  ;;  %v500_v63 = vld [vmem:[#allocation7 + $0x4f0] sm:$0xff] }
 0x248   :  { %463 = vmatpush.msra.mxu1 %v431_v62  ;;  %509 = vmatpush.msra.mxu2 %v500_v63 }
 0x249   :  { %v274_v1 = vmax.f32 %v272_v0, 0.0  ;;  %v501_v0 = vld [vmem:[#allocation7 + $0x4f8] sm:$0xff] }
 0x24a   :  { %529 = vmatpush.msra.mxu3 %v501_v0 }
 0x24b   :  { %309 = vmatmul.f32.vlgmr.msrb.gmra.mxu1 %v274_v1  ;;  %v498_v1 = vld [vmem:[#allocation7 + $0x4e0] sm:$0xff] }
 0x24c   :  { %510 = vmatpush.msra.mxu2 %v498_v1  ;;  %530 = vmatpush.msra.mxu3 %v499_v2 }
 0x24e   :  { %511 = vmatpush.msra.mxu2 %v496_v3  ;;  %531 = vmatpush.msra.mxu3 %v497_v4 }
 0x250   :  { %512 = vmatpush.msra.mxu2 %v494_v5  ;;  %532 = vmatpush.msra.mxu3 %v495_v6 }
 0x252   :  { %513 = vmatpush.msra.mxu2 %v492_v7  ;;  %533 = vmatpush.msra.mxu3 %v493_v8 }
 0x254   :  { %514 = vmatpush.msra.mxu2 %v490_v9  ;;  %534 = vmatpush.msra.mxu3 %v491_v10 }
 0x256   :  { %515 = vmatpush.msra.mxu2 %v488_v11  ;;  %535 = vmatpush.msra.mxu3 %v489_v12 }
 0x258   :  { %516 = vmatpush.msra.mxu2 %v486_v13  ;;  %536 = vmatpush.msra.mxu3 %v487_v14 }
 0x25a   :  { %517 = vmatpush.msra.mxu2 %v484_v15  ;;  %537 = vmatpush.msra.mxu3 %v485_v16 }
 0x2c8   :  { %v310_v18 = vpop.f32.mrf.mxu1 }
 0x2c9   :  { %v311_v19 = vadd.f32 %v310_v18, %v292_v17  ;;  %v482_v17 = vld [vmem:[#allocation7 + $0x460] sm:$0xff]  ;;  %v483_v18 = vld [vmem:[#allocation7 + $0x468] sm:$0xff] }
 0x2ca   :  { %518 = vmatpush.msra.mxu2 %v482_v17  ;;  %538 = vmatpush.msra.mxu3 %v483_v18 }
 0x2cb   :  { %313 = vst [vmem:[#allocation11] sm:$0xff] %v311_v19  ;;  %347 = vmatmul.f32.vlgmr.msrb.gmra.mxu2 %v311_v19  ;;  %v480_v19 = vld [vmem:[#allocation7 + $0x450] sm:$0xff] }
 0x2cc   :  { %519 = vmatpush.msra.mxu2 %v480_v19  ;;  %539 = vmatpush.msra.mxu3 %v481_v20  ;;  %610 = dma.vmem_to_hbm [thread:$0]  %s606_s3, 128, %s608_s17, [#allocation12]  }
 0x2ce   :  { %520 = vmatpush.msra.mxu2 %v478_v21  ;;  %540 = vmatpush.msra.mxu3 %v479_v22 }
 0x2d0   :  { %521 = vmatpush.msra.mxu2 %v476_v23  ;;  %541 = vmatpush.msra.mxu3 %v477_v24 }
 0x2d2   :  { %522 = vmatpush.msra.mxu2 %v474_v29  ;;  %542 = vmatpush.msra.mxu3 %v475_v30 }
 0x2d4   :  { %523 = vmatpush.msra.mxu2 %v472_v31  ;;  %543 = vmatpush.msra.mxu3 %v473_v32 }
 0x2d6   :  { %524 = vmatpush.msra.mxu2 %v470_v33  ;;  %544 = vmatpush.msra.mxu3 %v471_v34 }
 0x34e   :  { %v348_v37 = vpop.f32.mrf.mxu2 }
 0x34f   :  { %v349_v38 = vadd.f32 %v348_v37, %v330_v36 }
 0x351   :  { %v351_v39 = vmax.f32 %v349_v38, 0.0 }
 0x353   :  { %386 = vmatmul.f32.vlgmr.msrb.gmra.mxu3 %v351_v39  ;;  %v503_v39 = vld [vmem:[#allocation8 + $0x11] ss:$8 sm:$0x3] }
 0x354   :  { %v505_v40 = vperm.slane %v503_v39, 0  ;;  %v506_v41 = vperm.slane %v503_v39, 1 }
 0x3d6   :  { %v387_v57 = vpop.f32.mrf.mxu3 }
 0x3d7   :  { %v388_v58 = vadd.f32 %v387_v57, %v369_v56 }
 0x3d9   :  { %v390_v59 = vmax.f32 %v388_v58, 0.0 }
 0x3db   :  { %425 = vmatmul.f32.vlgmr.msra.gmra.mxu0 %v390_v59 }
 0x458   :  { %v426_v26 = vpop.f32.mrf.mxu0 }
 0x459   :  { %v427_v27 = vadd.f32 %v426_v26, %v408_v25 }
 0x45b   :  { %v429_v28 = vmax.f32 %v427_v27, 0.0 }
 0x45d   :  { %464 = vmatmul.f32.vlgmr.msra.gmra.mxu1 %v429_v28 }
 0x4da   :  { %v465_v36 = vpop.f32.mrf.mxu1 }
 0x4db   :  { %v466_v37 = vadd.f32 %v465_v36, %v447_v35 }
 0x4dd   :  { %v468_v38 = vmax.f32 %v466_v37, 0.0 }
 0x4df   :  { %525 = vmatmul.f32.vlgmr.msra.gmra.mxu2 %v468_v38  ;;  %545 = vmatmul.f32.vlgmr.msra.gmra.mxu3 %v468_v38 }
 0x562   :  { %v526_v42 = vpop.f32.mrf.mxu2  ;;  %v546_v43 = vpop.f32.mrf.mxu3 }
 0x563   :  { %v527_v44 = vadd.f32 %v526_v42, %v505_v40  ;;  %v547_v45 = vadd.f32 %v546_v43, %v506_v41 }
 0x565   :  { %v624_v46 = vmul.f32 -1.442695, %v527_v44  ;;  %v625_v47 = vmul.f32 -1.442695, %v547_v45 }
 0x567   :  { %636 = vpow2.f32 %v624_v46 }
 0x568   :  { %638 = vpow2.f32 %v625_v47 }
 0x56d   :  { %v637_v48 = vpop.eup %636 }
 0x56e   :  { %v639_v49 = vpop.eup %638  ;;  %v555_v50 = vadd.f32 1.0, %v637_v48 }
 0x56f   :  { %v556_v51 = vadd.f32 1.0, %v639_v49 }
 0x570   :  { %640 = vrcp.f32 %v555_v50  ;;  %v568_v58 = vand.u32 2147483648, %v555_v50  ;;  %v566_v60 = vand.u32 2147483647, %v555_v50  ;;  %vm562_vm2 = vweird.f32 %v555_v50 }
 0x571   :  { %642 = vrcp.f32 %v556_v51  ;;  %v583_v61 = vand.u32 2147483648, %v556_v51  ;;  %v581_v63 = vand.u32 2147483647, %v556_v51  ;;  %vm577_vm4 = vweird.f32 %v556_v51 }
 0x572   :  { %v569_v1 = vor.u32 1.1754944e-38, %v568_v58  ;;  %vm567_vm5 = vcmp.eq.f32.partialorder %v566_v60, 8.507059e+37 }
 0x573   :  { %v584_v4 = vor.u32 1.1754944e-38, %v583_v61  ;;  %vm582_vm7 = vcmp.eq.f32.partialorder %v581_v63, 8.507059e+37 }
 0x576   :  { %v641_v52 = vpop.eup %640 }
 0x577   :  { %v643_v53 = vpop.eup %642  ;;  %v558_v54 = vmul.f32 %v641_v52, %v555_v50  ;;  %vm563_vm0 = vweird.f32 %v641_v52 }
 0x578   :  { %v573_v55 = vmul.f32 %v643_v53, %v556_v51  ;;  %vm578_vm1 = vweird.f32 %v643_v53  ;;  %vm564_vm3 = vmor %vm562_vm2, %vm563_vm0 }
 0x579   :  { %v559_v56 = vsub.f32 1.0, %v558_v54  ;;  %vm579_vm6 = vmor %vm577_vm4, %vm578_vm1 }
 0x57a   :  { %v574_v57 = vsub.f32 1.0, %v573_v55 }
 0x57b   :  { %v560_v59 = vmul.f32 %v641_v52, %v559_v56 }
 0x57c   :  { %v575_v62 = vmul.f32 %v643_v53, %v574_v57 }
 0x57d   :  { %v561_v0 = vadd.f32 %v641_v52, %v560_v59 }
 0x57e   :  { %v576_v2 = vadd.f32 %v643_v53, %v575_v62 }
 0x57f   :  { %v565_v3 = vsel %vm564_vm3, %v641_v52, %v561_v0 }
 0x580   :  { %v570_v5 = vsel %vm567_vm5, %v569_v1, %v565_v3  ;;  %v580_v6 = vsel %vm579_vm6, %v643_v53, %v576_v2 }
 0x581   :  { %v585_v7 = vsel %vm582_vm7, %v584_v4, %v580_v6  ;;  %587 = vst [vmem:[#allocation10] sm:$0xff] %v570_v5 }
 0x582   :  { %588 = vst [vmem:[#allocation10 + $0x8] sm:$0xff] %v585_v7 }
 0x583   :  { %599 = dma.vmem_to_hbm [thread:$0]  %s595_s18, 256, %s597_s21, [#allocation4]  }
 0x584   :  { %794 = dma.done.wait [#allocation4], 256  }
 0x585   :  { %795 = vsyncadd [#allocation4], 4294967040 }
 0x586   :  { %796 = dma.done.wait [#allocation12], 128  }
 0x587   :  { %797 = vsyncadd [#allocation12], 4294967168 }
 0x588   :  { %619 = vsyncpa [#allocation3], 1 }
 0x589   :  { %620 = vsyncpa [#allocation6], 1 }
 0x58a   :  { %621 = vsyncpa [#allocation9], 1 }
 0x58b   :  { %622 = vsyncpa [#allocation4], 1 }
 0x58c   :  { %623 = vsyncpa [#allocation12], 1 }

</bundles_post_ra>
